<compile_context>
chip_gen: v5e
topology: v5e:2x2
jax: 0.10.0
libtpu: 0.0.40
codegen_flags: <defaults>
</compile_context>

<pallas_src>
import functools

import jax
import jax.numpy as jnp
import numpy as np
from jax import lax
from jax.experimental import pallas as pl
from jax.experimental.pallas import tpu as pltpu

_SUBLANES = 8
_LANES = 128


def _round_up(x, m):
    return ((x + m - 1) // m) * m


def _sum_all(x):
    """Full reduce to (1, 1) as two single-axis (lane, then sublane) reduces."""
    return jnp.sum(jnp.sum(x, axis=1, keepdims=True), axis=0, keepdims=True)


def _max_all(x):
    return jnp.max(jnp.max(x, axis=1, keepdims=True), axis=0, keepdims=True)


def _min_all(x):
    return jnp.min(jnp.min(x, axis=1, keepdims=True), axis=0, keepdims=True)


def _sgpool_kernel(n_valid, start_ref, xyzp_ref, feat_ref,
                   newxyz_ref, newfeat_ref, idx_ref):
    """One grid step = one batch element: packed FPS loop + one MXU gather."""
    b = pl.program_id(0)
    npoint = newxyz_ref.shape[1]
    m = xyzp_ref.shape[3]                       # packed lane extent (padded_N / 8)
    npack = _SUBLANES * m

    # Packed coordinate planes: points laid out densely over (sublane, lane).
    X = xyzp_ref[0, 0]                          # (8, M) f32
    Y = xyzp_ref[0, 1]                          # (8, M) f32
    Z = xyzp_ref[0, 2]                          # (8, M) f32

    # Original point index per packed slot + validity mask (padding must never
    # win the argmax, so its distance is pinned to -1 < any valid sq-distance).
    sub_i = lax.broadcasted_iota(jnp.int32, (_SUBLANES, m), 0)
    lane_i = lax.broadcasted_iota(jnp.int32, (_SUBLANES, m), 1)
    piota = sub_i * m + lane_i                  # (8, M) int32
    valid = piota < n_valid

    dist0 = jnp.where(valid, 1e10, -1.0).astype(jnp.float32)           # (8, M)
    farthest0 = jnp.full((1, 1), start_ref[b], dtype=jnp.int32)        # (1, 1)

    def body(i, carry):
        dist, farthest = carry
        # Record the selected index: a single (1,1) store; the dense one-hot is
        # built once after the loop.
        idx_ref[pl.ds(i, 1), :] = farthest
        onehot = piota == farthest                                      # (8, M)
        # Exact one-hot extraction of the centroid coordinates (packed reduces).
        cx = _sum_all(jnp.where(onehot, X, 0.0))                        # (1, 1)
        cy = _sum_all(jnp.where(onehot, Y, 0.0))
        cz = _sum_all(jnp.where(onehot, Z, 0.0))
        # Write the selected point straight into new_xyz (no post-loop M=3 matmul).
        newxyz_ref[0, pl.ds(i, 1), :] = jnp.concatenate([cx, cy, cz], axis=1)
        # FPS distance update — pure VPU on dense (8, M) tiles.
        d = (X - cx) ** 2 + (Y - cy) ** 2 + (Z - cz) ** 2               # (8, M)
        dist = jnp.minimum(dist, d)
        # argmax with first-index tie-break (matches np.argmax).
        maxv = _max_all(dist)                                           # (1, 1)
        cand = jnp.where(dist == maxv, piota, npack)
        farthest = _min_all(cand).astype(jnp.int32)                     # (1, 1)
        return dist, farthest

    lax.fori_loop(0, npoint, body, (dist0, farthest0))

    # Post-loop feature gather: build the one-hot selection densely (8 rows per
    # vreg) in the feature dtype (0/1 is exact in bf16) and do one canonical
    # (P, N) @ (N, C) -> (P, C) MXU matmul.  C sits on the output lane axis.
    feat = feat_ref[0]                                                  # (N, C)
    n_pts = feat.shape[0]
    idxs = idx_ref[...]                                                 # (P, 1)
    lane_n = lax.broadcasted_iota(jnp.int32, (1, n_pts), 1)
    sel = (idxs == lane_n).astype(feat.dtype)                           # (P, N)
    newfeat_ref[0] = jnp.dot(
        sel, feat, preferred_element_type=jnp.float32
    ).astype(newfeat_ref.dtype)


def sgpool(xyz, features, npoint, start_idx):
    """xyz: [B, N, 3], features: [B, N, C] -> ([B, 3, npoint], [B, C, npoint])."""
    B, N, _ = xyz.shape
    C = features.shape[2]

    # Pack the (tiny) coordinate tensor for the serial loop: transpose to [B,3,N],
    # pad N to a multiple of 8*128 (lane-dense packed tiles), reshape to [B,3,8,M].
    npack = _round_up(N, _SUBLANES * _LANES)
    m = npack // _SUBLANES
    xyz_t = jnp.transpose(xyz, (0, 2, 1)).astype(jnp.float32)           # [B, 3, N]
    xyz_p = jnp.pad(xyz_t, ((0, 0), (0, 0), (0, npack - N)))
    xyz_p = xyz_p.reshape(B, 3, _SUBLANES, m)                           # [B, 3, 8, M]
    # Features go in untransposed and unpadded, in their original dtype.

    grid_spec = pltpu.PrefetchScalarGridSpec(
        num_scalar_prefetch=1,
        grid=(B,),
        in_specs=[
            pl.BlockSpec((1, 3, _SUBLANES, m), lambda b, start: (b, 0, 0, 0)),
            pl.BlockSpec((1, N, C), lambda b, start: (b, 0, 0)),
        ],
        out_specs=[
            pl.BlockSpec((1, npoint, 3), lambda b, start: (b, 0, 0)),
            pl.BlockSpec((1, npoint, C), lambda b, start: (b, 0, 0)),
        ],
        scratch_shapes=[pltpu.VMEM((npoint, 1), jnp.int32)],   # selected indices
    )
    new_xyz_p3, new_feat_pc = pl.pallas_call(
        functools.partial(_sgpool_kernel, N),
        out_shape=(
            jax.ShapeDtypeStruct((B, npoint, 3), jnp.float32),
            jax.ShapeDtypeStruct((B, npoint, C), features.dtype),
        ),
        grid_spec=grid_spec,
        compiler_params=pltpu.CompilerParams(
            dimension_semantics=("parallel",),
            vmem_limit_bytes=32 * 1024 * 1024,
        ),
    )(start_idx.astype(jnp.int32), xyz_p, features)
    # Kernel emits row-major [B, P, 3] / [B, P, C]; produce the module's
    # [B, 3, P] / [B, C, P] layout with cheap wrapper transposes of the outputs.
    return (jnp.transpose(new_xyz_p3, (0, 2, 1)),
            jnp.transpose(new_feat_pc, (0, 2, 1)))


def sgpool_ref(xyz, features, npoint, start_idx):
    """Pure-numpy reference mirroring the PyTorch module (deterministic seed pts)."""
    xyz = np.asarray(xyz, dtype=np.float32)
    features = np.asarray(features, dtype=np.float32)
    B, N, _ = xyz.shape
    centroids = np.zeros((B, npoint), dtype=np.int64)
    distance = np.full((B, N), 1e10, dtype=np.float32)
    farthest = np.asarray(start_idx).astype(np.int64)
    batch_indices = np.arange(B)
    for i in range(npoint):
        centroids[:, i] = farthest
        centroid = xyz[batch_indices, farthest, :].reshape(B, 1, 3)
        dist = np.sum((xyz - centroid) ** 2, -1)
        distance = np.minimum(distance, dist)
        farthest = np.argmax(distance, -1)
    new_xyz = np.stack([xyz[b, centroids[b]] for b in range(B)]).transpose(0, 2, 1)
    new_feat = np.stack([features[b, centroids[b]] for b in range(B)]).transpose(0, 2, 1)
    return new_xyz, new_feat


if __name__ == "__main__":
    B, N, C, NPOINT = 2, 16, 4, 4
    key = jax.random.PRNGKey(0)
    k1, k2, k3 = jax.random.split(key, 3)
    xyz = jax.random.normal(k1, (B, N, 3), dtype=jnp.float32)
    features = jax.random.normal(k2, (B, N, C), dtype=jnp.float32)
    # deterministic stand-in for torch.randint(0, N, (B,)) initial FPS seeds
    start_idx = jax.random.randint(k3, (B,), 0, N, dtype=jnp.int32)

    new_xyz, new_feat = sgpool(xyz, features, NPOINT, start_idx)
    jax.block_until_ready((new_xyz, new_feat))

    ref_xyz, ref_feat = sgpool_ref(xyz, features, NPOINT, start_idx)
    np.testing.assert_allclose(np.asarray(new_xyz), ref_xyz, rtol=1e-5, atol=1e-5)
    np.testing.assert_allclose(np.asarray(new_feat), ref_feat, rtol=1e-5, atol=1e-5)

    print("KERNEL_OK")
</pallas_src>

<mosaic_0001>
module attributes {stable_mosaic.version = 11 : i64} {
  func.func @_sgpool_kernel(%arg0: i32, %arg1: memref<2xi32, #tpu.memory_space<smem>>, %arg2: memref<1x3x8x128xf32, #tpu.memory_space<vmem>>, %arg3: memref<1x16x4xf32, #tpu.memory_space<vmem>>, %arg4: memref<1x4x3xf32, #tpu.memory_space<vmem>>, %arg5: memref<1x4x4xf32, #tpu.memory_space<vmem>>, %arg6: memref<4x1xi32, #tpu.memory_space<vmem>>) attributes {dimension_semantics = [#tpu.dimension_semantics<parallel>], iteration_bounds = array<i64: 2>, scalar_prefetch = 1 : i64, scratch_operands = 1 : i64, tpu.core_type = #tpu.core_type<tc>, window_params = [{transform_indices = @transform_0, window_bounds = array<i64: 1, 3, 8, 128>}, {transform_indices = @transform_1, window_bounds = array<i64: 1, 16, 4>}, {transform_indices = @transform_2, window_bounds = array<i64: 1, 4, 3>}, {transform_indices = @transform_3, window_bounds = array<i64: 1, 4, 4>}]} {
    %c0 = arith.constant 0 : index
    %c0_0 = arith.constant 0 : index
    %c0_1 = arith.constant 0 : index
    %c0_2 = arith.constant 0 : index
    %0 = vector.load %arg2[%c0, %c0_0, %c0_1, %c0_2] : memref<1x3x8x128xf32, #tpu.memory_space<vmem>>, vector<1x1x8x128xf32>
    %1 = vector.shape_cast %0 : vector<1x1x8x128xf32> to vector<8x128xf32>
    %c0_3 = arith.constant 0 : index
    %c1 = arith.constant 1 : index
    %c0_4 = arith.constant 0 : index
    %c0_5 = arith.constant 0 : index
    %2 = vector.load %arg2[%c0_3, %c1, %c0_4, %c0_5] : memref<1x3x8x128xf32, #tpu.memory_space<vmem>>, vector<1x1x8x128xf32>
    %3 = vector.shape_cast %2 : vector<1x1x8x128xf32> to vector<8x128xf32>
    %c0_6 = arith.constant 0 : index
    %c2 = arith.constant 2 : index
    %c0_7 = arith.constant 0 : index
    %c0_8 = arith.constant 0 : index
    %4 = vector.load %arg2[%c0_6, %c2, %c0_7, %c0_8] : memref<1x3x8x128xf32, #tpu.memory_space<vmem>>, vector<1x1x8x128xf32>
    %5 = vector.shape_cast %4 : vector<1x1x8x128xf32> to vector<8x128xf32>
    %6 = tpu.iota {dimensions = array<i32: 0>} : vector<8x128xi32>
    %7 = tpu.iota {dimensions = array<i32: 1>} : vector<8x128xi32>
    %c128_i32 = arith.constant 128 : i32
    %8 = vector.broadcast %c128_i32 : i32 to vector<8x128xi32>
    %9 = arith.muli %6, %8 : vector<8x128xi32>
    %10 = arith.addi %9, %7 : vector<8x128xi32>
    %c16_i32 = arith.constant 16 : i32
    %11 = vector.broadcast %c16_i32 : i32 to vector<8x128xi32>
    %12 = arith.cmpi slt, %10, %11 : vector<8x128xi32>
    %cst = arith.constant 1.000000e+10 : f32
    %cst_9 = arith.constant -1.000000e+00 : f32
    %13 = vector.broadcast %cst : f32 to vector<8x128xf32>
    %14 = vector.broadcast %cst_9 : f32 to vector<8x128xf32>
    %15 = arith.select %12, %13, %14 : vector<8x128xi1>, vector<8x128xf32>
    %16 = arith.index_cast %arg0 : i32 to index
    %17 = memref.load %arg1[%16] : memref<2xi32, #tpu.memory_space<smem>>
    %18 = vector.broadcast %17 : i32 to vector<1x1xi32>
    %c0_i32 = arith.constant 0 : i32
    %c4_i32 = arith.constant 4 : i32
    %19 = arith.addi %c0_i32, %c4_i32 : i32
    %c1_i32 = arith.constant 1 : i32
    %20:2 = scf.for %arg7 = %c0_i32 to %19 step %c1_i32 iter_args(%arg8 = %15, %arg9 = %18) -> (vector<8x128xf32>, vector<1x1xi32>)  : i32 {
      %34 = arith.index_cast %arg7 : i32 to index
      %c0_20 = arith.constant 0 : index
      %35 = vector.load %arg6[%34, %c0_20] : memref<4x1xi32, #tpu.memory_space<vmem>>, vector<1x1xi32>
      tpu.vector_store %arg6[%34, %c0_20], %arg9 {strides = array<i32>} : memref<4x1xi32, #tpu.memory_space<vmem>>, vector<1x1xi32>,
      %36 = vector.broadcast %arg9 : vector<1x1xi32> to vector<8x128xi32>
      %37 = arith.cmpi eq, %10, %36 : vector<8x128xi32>
      %cst_21 = arith.constant 0.000000e+00 : f32
      %38 = vector.broadcast %cst_21 : f32 to vector<8x128xf32>
      %39 = arith.select %37, %1, %38 : vector<8x128xi1>, vector<8x128xf32>
      %cst_22 = arith.constant dense<0.000000e+00> : vector<8xf32>
      %40 = vector.multi_reduction <add>, %39, %cst_22 [1] : vector<8x128xf32> to vector<8xf32>
      %41 = vector.shape_cast %40 : vector<8xf32> to vector<8x1xf32>
      %cst_23 = arith.constant dense<0.000000e+00> : vector<1xf32>
      %42 = vector.multi_reduction <add>, %41, %cst_23 [0] : vector<8x1xf32> to vector<1xf32>
      %43 = vector.shape_cast %42 : vector<1xf32> to vector<1x1xf32>
      %cst_24 = arith.constant 0.000000e+00 : f32
      %44 = vector.broadcast %cst_24 : f32 to vector<8x128xf32>
      %45 = arith.select %37, %3, %44 : vector<8x128xi1>, vector<8x128xf32>
      %cst_25 = arith.constant dense<0.000000e+00> : vector<8xf32>
      %46 = vector.multi_reduction <add>, %45, %cst_25 [1] : vector<8x128xf32> to vector<8xf32>
      %47 = vector.shape_cast %46 : vector<8xf32> to vector<8x1xf32>
      %cst_26 = arith.constant dense<0.000000e+00> : vector<1xf32>
      %48 = vector.multi_reduction <add>, %47, %cst_26 [0] : vector<8x1xf32> to vector<1xf32>
      %49 = vector.shape_cast %48 : vector<1xf32> to vector<1x1xf32>
      %cst_27 = arith.constant 0.000000e+00 : f32
      %50 = vector.broadcast %cst_27 : f32 to vector<8x128xf32>
      %51 = arith.select %37, %5, %50 : vector<8x128xi1>, vector<8x128xf32>
      %cst_28 = arith.constant dense<0.000000e+00> : vector<8xf32>
      %52 = vector.multi_reduction <add>, %51, %cst_28 [1] : vector<8x128xf32> to vector<8xf32>
      %53 = vector.shape_cast %52 : vector<8xf32> to vector<8x1xf32>
      %cst_29 = arith.constant dense<0.000000e+00> : vector<1xf32>
      %54 = vector.multi_reduction <add>, %53, %cst_29 [0] : vector<8x1xf32> to vector<1xf32>
      %55 = vector.shape_cast %54 : vector<1xf32> to vector<1x1xf32>
      %56 = tpu.concatenate %43, %49, %55 in 1 : vector<1x1xf32>, vector<1x1xf32>, vector<1x1xf32> -> vector<1x3xf32>
      %c0_30 = arith.constant 0 : index
      %57 = arith.index_cast %arg7 : i32 to index
      %c0_31 = arith.constant 0 : index
      %58 = vector.load %arg4[%c0_30, %57, %c0_31] : memref<1x4x3xf32, #tpu.memory_space<vmem>>, vector<1x1x3xf32>
      %59 = vector.shape_cast %58 : vector<1x1x3xf32> to vector<1x3xf32>
      %60 = vector.shape_cast %56 : vector<1x3xf32> to vector<1x1x3xf32>
      tpu.vector_store %arg4[%c0_30, %57, %c0_31], %60 {strides = array<i32>} : memref<1x4x3xf32, #tpu.memory_space<vmem>>, vector<1x1x3xf32>,
      %61 = vector.broadcast %43 : vector<1x1xf32> to vector<8x128xf32>
      %62 = arith.subf %1, %61 : vector<8x128xf32>
      %63 = arith.mulf %62, %62 : vector<8x128xf32>
      %64 = vector.broadcast %49 : vector<1x1xf32> to vector<8x128xf32>
      %65 = arith.subf %3, %64 : vector<8x128xf32>
      %66 = arith.mulf %65, %65 : vector<8x128xf32>
      %67 = arith.addf %63, %66 : vector<8x128xf32>
      %68 = vector.broadcast %55 : vector<1x1xf32> to vector<8x128xf32>
      %69 = arith.subf %5, %68 : vector<8x128xf32>
      %70 = arith.mulf %69, %69 : vector<8x128xf32>
      %71 = arith.addf %67, %70 : vector<8x128xf32>
      %72 = arith.minimumf %arg8, %71 : vector<8x128xf32>
      %cst_32 = arith.constant dense<0xFF800000> : vector<8xf32>
      %73 = vector.multi_reduction <maximumf>, %72, %cst_32 [1] : vector<8x128xf32> to vector<8xf32>
      %74 = vector.shape_cast %73 : vector<8xf32> to vector<8x1xf32>
      %cst_33 = arith.constant dense<0xFF800000> : vector<1xf32>
      %75 = vector.multi_reduction <maximumf>, %74, %cst_33 [0] : vector<8x1xf32> to vector<1xf32>
      %76 = vector.shape_cast %75 : vector<1xf32> to vector<1x1xf32>
      %77 = vector.broadcast %76 : vector<1x1xf32> to vector<8x128xf32>
      %78 = arith.cmpf oeq, %72, %77 : vector<8x128xf32>
      %c1024_i32 = arith.constant 1024 : i32
      %79 = vector.broadcast %c1024_i32 : i32 to vector<8x128xi32>
      %80 = arith.select %78, %10, %79 : vector<8x128xi1>, vector<8x128xi32>
      %cst_34 = arith.constant dense<2147483647> : vector<8xi32>
      %81 = vector.multi_reduction <minsi>, %80, %cst_34 [1] : vector<8x128xi32> to vector<8xi32>
      %82 = vector.shape_cast %81 : vector<8xi32> to vector<8x1xi32>
      %cst_35 = arith.constant dense<2147483647> : vector<1xi32>
      %83 = vector.multi_reduction <minsi>, %82, %cst_35 [0] : vector<8x1xi32> to vector<1xi32>
      %84 = vector.shape_cast %83 : vector<1xi32> to vector<1x1xi32>
      scf.yield %72, %84 : vector<8x128xf32>, vector<1x1xi32>
    }
    %c4_i32_10 = arith.constant 4 : i32
    %c0_11 = arith.constant 0 : index
    %c0_12 = arith.constant 0 : index
    %c0_13 = arith.constant 0 : index
    %21 = vector.load %arg3[%c0_11, %c0_12, %c0_13] : memref<1x16x4xf32, #tpu.memory_space<vmem>>, vector<1x16x4xf32>
    %22 = vector.shape_cast %21 : vector<1x16x4xf32> to vector<16x4xf32>
    %c0_14 = arith.constant 0 : index
    %c0_15 = arith.constant 0 : index
    %23 = vector.load %arg6[%c0_14, %c0_15] : memref<4x1xi32, #tpu.memory_space<vmem>>, vector<4x1xi32>
    %24 = tpu.iota {dimensions = array<i32: 1>} : vector<1x16xi32>
    %25 = vector.broadcast %23 : vector<4x1xi32> to vector<4x16xi32>
    %26 = vector.broadcast %24 : vector<1x16xi32> to vector<4x16xi32>
    %27 = arith.cmpi eq, %25, %26 : vector<4x16xi32>
    %28 = arith.extui %27 : vector<4x16xi1> to vector<4x16xi32>
    %29 = arith.sitofp %28 : vector<4x16xi32> to vector<4x16xf32>
    %cst_16 = arith.constant dense<0.000000e+00> : vector<4x4xf32>
    %30 = tpu.matmul %29, %22, %cst_16 {dimension_numbers = #tpu.dot_dimension_numbers<[1], [0], [0], [1], [0, 0, 1, 1], [], []>} : vector<4x16xf32>, vector<16x4xf32>, vector<4x4xf32> -> vector<4x4xf32>
    %c0_17 = arith.constant 0 : index
    %c0_18 = arith.constant 0 : index
    %c0_19 = arith.constant 0 : index
    %31 = vector.load %arg5[%c0_17, %c0_18, %c0_19] : memref<1x4x4xf32, #tpu.memory_space<vmem>>, vector<1x4x4xf32>
    %32 = vector.shape_cast %31 : vector<1x4x4xf32> to vector<4x4xf32>
    %33 = vector.shape_cast %30 : vector<4x4xf32> to vector<1x4x4xf32>
    tpu.vector_store %arg5[%c0_17, %c0_18, %c0_19], %33 {strides = array<i32>} : memref<1x4x4xf32, #tpu.memory_space<vmem>>, vector<1x4x4xf32>,
    return
  }
  func.func @transform_0(%arg0: i32, %arg1: memref<2xi32, #tpu.memory_space<smem>>) -> (i32, i32, i32, i32) {
    %c0_i32 = arith.constant 0 : i32
    %c0_i32_0 = arith.constant 0 : i32
    %c0_i32_1 = arith.constant 0 : i32
    %c0_i32_2 = arith.constant 0 : i32
    return %arg0, %c0_i32, %c0_i32_0, %c0_i32_1 : i32, i32, i32, i32
  }
  func.func @transform_1(%arg0: i32, %arg1: memref<2xi32, #tpu.memory_space<smem>>) -> (i32, i32, i32) {
    %c0_i32 = arith.constant 0 : i32
    %c0_i32_0 = arith.constant 0 : i32
    %c0_i32_1 = arith.constant 0 : i32
    return %arg0, %c0_i32, %c0_i32_0 : i32, i32, i32
  }
  func.func @transform_2(%arg0: i32, %arg1: memref<2xi32, #tpu.memory_space<smem>>) -> (i32, i32, i32) {
    %c0_i32 = arith.constant 0 : i32
    %c0_i32_0 = arith.constant 0 : i32
    %c0_i32_1 = arith.constant 0 : i32
    return %arg0, %c0_i32, %c0_i32_0 : i32, i32, i32
  }
  func.func @transform_3(%arg0: i32, %arg1: memref<2xi32, #tpu.memory_space<smem>>) -> (i32, i32, i32) {
    %c0_i32 = arith.constant 0 : i32
    %c0_i32_0 = arith.constant 0 : i32
    %c0_i32_1 = arith.constant 0 : i32
    return %arg0, %c0_i32, %c0_i32_0 : i32, i32, i32
  }
}

</mosaic_0001>

<bundles_post_ra>
// kernel: tpu_custom_call.1
= control target key start
LH: loop header
LB: loop body
LE: loop exit
PB: predicated region body
PF: predicated region fallthrough
CT: control target
= control target key end

     0   :  { %s745_s18 = smov [#allocation4]   ;;  %s958_s0 = inlined_call_operand.vmem [shape: s32[2], index: 0, kind: input, shape index: {}]   ;;  %s959_s1 = inlined_call_operand.hbm [shape: f32[2,3,8,128], index: 1, kind: input, shape index: {}]   ;;  %s960_s2 = inlined_call_operand.vmem [shape: f32[2,16,4], index: 2, kind: input, shape index: {}]   ;;  %s961_s3 = inlined_call_operand.vmem [shape: f32[2,4,3], index: 3, kind: output, shape index: {0}]   ;;  %s962_s4 = inlined_call_operand.hbm [shape: f32[2,4,4], index: 4, kind: output, shape index: {1}]  }
   0x1   :  { %s11_s17 = sshll.u32 %s958_s0, 4  ;;  %s12_s17 = int_to_ptr.vmem [resolvable:$true] %s11_s17 }
   0x2   :  { %14 = dma.vmem_to_smem %s12_s17, 16, %s745_s18, [#allocation3] }
   0x3   :  { %707 = dma.done.wait [#allocation3], 16 }
   0x4   :  { %708 = vsyncadd [#allocation3], 4294967280 }
   0x5   :  { %17 = sfence }
   0x6   :  { %18 = vsyncpa [#allocation6], 0 }
   0x7   :  { %20 = vsyncpa [#allocation6 + $0x1], 0 }
   0x8   :  { %21 = vsyncpa [#allocation7], 0 }
   0x9   :  { %23 = vsyncpa [#allocation7 + $0x1], 0  ;;  %s779_s19 = smov 0   ;;  %s781_s20 = smov 0  }
   0xa   :  { %s783_s21 = smov 0   ;;  %s785_s22 = smov 0  }
   0xb LB: > { %s800_s0 = sadd.s32 4294967295, %s731_s22   ;;  %s511_s23 = sadd.s32 4294967294, %s731_s22   ;;  %s731_s22 = sphi %s785_s22, %s970_s22   ;;  %s727_s21 = sphi %s783_s21, %s969_s21   ;;  %s723_s20 = sphi %s781_s20, %s968_s20   ;;  %s719_s19 = sphi %s779_s19, %s967_s19  }
   0xc   : > { %s804_s24 = sadd.s32 1, %s731_s22   ;;  %s36_s25 = sadd.s32 1, %s727_s21 }
   0xd   : > { %s33_s26 = ssub.s32 %s731_s22, %s804_s24  ;;  %p43_p0 = scmp.ne.s32.totalorder %s727_s21, %s723_s20 }
   0xe   : > { %p34_p1 = scmp.eq.s32.totalorder %s33_s26, 0  ;;  %p44_p2 = scmp.eq.s32.totalorder %s731_s22, 0 }
   0xf   : > { %p49_p3 = scmp.ne.s32.totalorder %s723_s20, %s719_s19  ;;  %p50_p4 = scmp.eq.s32.totalorder %s800_s0, 0 }
  0x10   : > { %s816_s27 = scalar_select %p34_p1, %s727_s21, %s36_s25  }
  0x11   : > { %p45_p5 = por %p44_p2, %p43_p0  ;;  %p818_p6 = por %p50_p4, %p49_p3 }
  0x12   : > { %p125_p7 = scmp.eq.s32.totalorder %s800_s0, 1  ;;  %p131_p8 = scmp.eq.s32.totalorder %s511_s23, 1 }
  0x13   : > { %p513_p9 = scmp.ge.s32.totalorder %s731_s22, 2  ;;  %p544_p10 = scmp.lt.s32.totalorder %s731_s22, 2 }
  0x14   : > { %p825_p11 = por %p125_p7, %p43_p0  ;;  %p829_p12 = por %p131_p8, %p49_p3 }
  0x15   : > { %s151_s5 = sand.u32 1, %s727_s21   ;;  %s530_s6 = smul.u32 24, %s731_s22 }
  0x16   : > { %s529_s7 = smul.u32 24, %s151_s5  ;;  %p838_p13 = pnand %p544_p10, %p45_p5 }
  0x17   : > { %s160_s10 = scalar_lea.hbm %s959_s1, %s530_s6  ;;  %s152_s15 = scalar_lea.sflag [#allocation6], %s151_s5 }
  0x18   : > { %s161_s12 = sshll.u32 %s160_s10, 4  ;;  %s155_s13 = scalar_lea.vmem [#allocation5], %s529_s7  ;;  %s162_s12 = int_to_ptr.hbm [resolvable:$true] %s161_s12 }
  0x19   : > { %s163_s14 = sshll.u32 %s155_s13, 4  ;;  %s621_s16 = sshra.s32 %s162_s12, 4  ;;  %s164_s14 = int_to_ptr.vmem [resolvable:$true] %s163_s14  ;;  %s622_s16 = int_to_ptr.hbm [resolvable:$true] %s621_s16 }
  0x1a   : > { %s623_s17 = scalar_lea.hbm %s622_s16, 24  ;;  %p625_p1 = pneg %p838_p13 }
  0x1b   : > { %p624_p0 = scmp.ne.s32.totalorder %s622_s16, %s623_s17  ;;  %s628_s25 = scalar_lea.hbm %s959_s1, 48 }
  0x1c   : > { %p629_p4 = scmp.lt.s32.totalorder %s622_s16, %s959_s1  ;;  %p630_p5 = scmp.lt.s32.totalorder %s628_s25, %s623_s17 }
  0x1d   : > { %p626_p2 = pnand %p625_p1, %p624_p0 }
  0x1e   : > { %p631_p7 = por %p630_p5, %p629_p4 }
  0x1f   : > { %p627_p3 = pneg %p626_p2 }
  0x21   : > { %p632_p8 = pnand %p631_p7, %p627_p3 }
  0x23   : > { %635 = shalt.err (!%p632_p8)
}
  0x24   : > { %s746_s5 = smov 128   ;;  %s747_s7 = smov 8  }
  0x25   : > { %539 = dma.hbm_to_vmem [thread:$0]  (!%p838_p13), %s162_s12, 384, %s164_s14, %s152_s15, %s746_s5, %s746_s5, %s747_s7  }
  0x26   : > { %p515_p10 = scmp.ge.s32.totalorder %s731_s22, 1  ;;  %p179_p0 = scmp.lt.s32.totalorder %s731_s22, 3 }
  0x28   : > { %p180_p1 = pnand %p515_p10, %p179_p0 }
  0x29   : > { %s855_s8 = sand.u32 (!%p180_p1), 1, %s723_s20  }
  0x2a   : > { %183 = sbr.rel (%p180_p1) target bundleno = 592 (0x250), region = 28  ;;  %s186_s10 = scalar_lea.sflag (!%p180_p1), [#allocation6], %s855_s8 }
  0x2b   : > { %s531_s9 = smul.u32 (!%p180_p1), 24, %s855_s8 }
  0x2d   : > { %s189_s13 = scalar_lea.vmem (!%p180_p1), [#allocation5], %s531_s9 }
  0x2f   : > { %710 = dma.done.wait (%p818_p6), %s186_s10, 384  }
  0x30   : > { %712 = vsyncadd (%p818_p6), %s186_s10, 4294966912  ;;  %s516_s11 = sshll.u32 %s855_s8, 2  ;;  %p222_p13 = scmp.lt.s32.totalorder %s800_s0, 1  ;;  %v236_v0 = vlaneseq  ;;  %v882_v5 = vld [vmem:[%s189_s13] sm:$0xff]  ;;  %v884_v6 = vld [vmem:[%s189_s13 + $0x8] sm:$0xff]  ;;  %v748_v9 = vmov -1.0  }
  0x31   : > { %s244_s12 = sld [smem:[#allocation4 + %s800_s0]]  ;;  %v886_v7 = vld [vmem:[%s189_s13 + $0x10] sm:$0xff]  ;;  %s889_s6 = scalar_lea.vmem [#allocation8], %s516_s11 }
  0x32   : > { %s223_s14 = scalar_select %p222_p13, %s800_s0, 1  ;;  %v237_v1 = vshrl.u32 %v236_v0, 7  ;;  %v867_v2 = vand.u32 127, %v236_v0 }
  0x33   : > { %s895_s5 = smov 0  }
  0x34   : > { %s528_s15 = sshll.u32 %s223_s14, 4  ;;  %s519_s16 = sshll.u32 %s223_s14, 2  ;;  %v240_v3 = vmul.u32 128, %v237_v1 }
  0x35   : > { %s872_s28 = scalar_lea.vmem %s960_s2, %s528_s15  ;;  %s877_s26 = scalar_lea.vmem %s961_s3, %s519_s16 }
  0x36   : > { %v880_v4 = vadd.s32 %v240_v3, %v867_v2 }
  0x37   : > { %v245_v8 = vstv %s244_s12  }
  0x38   : > { %vm242_vm0 = vcmp.lt.s32.totalorder %v880_v4, 16 }
  0x39   : > { %v243_v10 = vsel %vm242_vm0, 1e+10, %v748_v9  }
  0x3a LB: >> { %vm255_vm1 = vcmask 0   ;;  %vm257_vm2 = vcmp.eq.s32.totalorder %v880_v4, %v735_v8  ;;  %s254_s7 = scalar_lea.vmem [#allocation2], %s743_s5  ;;  %vm285_vm3 = vcmask 7168   ;;  %vm287_vm4 = vcmask 15360   ;;  %s289_s9 = scalar_lea.vmem %s877_s26, %s743_s5  ;;  %s743_s5 = sphi %s895_s5, %s251_s5   ;;  %v739_v10 = vphi %v243_v10, %v300_v10   ;;  %v735_v8 = vphi %v245_v8, %v333_v8  }
  0x3b   : >> { %v258_v11 = vsel %vm257_vm2, %v882_v5, 0.0  ;;  %256 = vst.msk [vmem:[%s254_s7] sm:$0x1] %vm255_vm1, %v735_v8  ;;  %v276_v12 = vsel %vm257_vm2, %v886_v7, 0.0  ;;  %v267_v13 = vsel %vm257_vm2, %v884_v6, 0.0  ;;  %vm290_vm5 = vcmask 16384  }
  0x3c   : >> { %259 = vadd.xlane.f32.xlu0 %v258_v11  ;;  %277 = vadd.xlane.f32.xlu1 %v276_v12  ;;  %s251_s5 = sadd.s32 1, %s743_s5  }
  0x3d   : >> { %p248_p6 = scmp.ge.s32.totalorder %s251_s5, 4  }
  0x3e   : > { %v749_v12 = vmov (%p248_p6), 0   ;;  %vm343_vm11 = vcmask (%p248_p6), 130048   ;;  %s525_s10 = sshll.u32 (%p248_p6), %s800_s0, 2  ;;  %s389_s14 = sshll.u32 (%p248_p6), %s889_s6, 4  ;;  %vm367_vm13 = vcmask (%p248_p6), 27648   ;;  %s390_s14 = int_to_ptr.vmem [resolvable:$true] %s389_s14 }
  0x3f   : > { %608 = vset.pattern.permute.xlu0 (%p248_p6), %v749_v12  ;;  %s387_s12 = scalar_lea.hbm (%p248_p6), %s962_s4, %s525_s10  ;;  %s374_s16 = scalar_lea.sflag (%p248_p6), [#allocation7], %s855_s8 }
  0x40   : > { %s391_s15 = sshll.u32 (%p248_p6), %s387_s12, 4  ;;  %s671_s23 = scalar_lea.hbm (%p248_p6), %s962_s4, 8  ;;  %s392_s15 = int_to_ptr.hbm [resolvable:$true] %s391_s15 }
  0x41   : > { %s665_s17 = sshra.s32 (%p248_p6), %s392_s15, 4  ;;  %s666_s17 = int_to_ptr.hbm [resolvable:$true] %s665_s17 }
  0x42   : > { %v336_v11 = vld [vmem:[#allocation2] sm:$0xf] (%p248_p6)  ;;  %s667_s18 = scalar_lea.hbm (%p248_p6), %s666_s17, 4  ;;  %p672_p5 = scmp.lt.s32.totalorder (%p248_p6), %s666_s17, %s962_s4 }
  0x43   : > { %p668_p2 = scmp.ne.s32.totalorder (%p248_p6), %s666_s17, %s667_s18  ;;  %p673_p7 = scmp.lt.s32.totalorder (%p248_p6), %s671_s23, %s667_s18 }
  0x44   : >> { %268 = vadd.xlane.f32.xlu0 %v267_v13  ;;  %v335_v13 = vld [vmem:[%s872_s28 + $0x8] sm:$0xff] (%p248_p6) }
  0x45   : > { %361 = vmatpush.msra.mxu0 (%p248_p6), %v335_v13  ;;  %p669_p3 = pnand (%p248_p6), %p668_p2, %p825_p11  ;;  %p674_p8 = por (%p248_p6), %p673_p7, %p672_p5 }
  0x47   : > { %p670_p4 = pneg (%p248_p6), %p669_p3 }
  0x49   : > { %p675_p10 = pnand (%p248_p6), %p674_p8, %p670_p4 }
  0x58   : > { %338 = vperm.xlu0 (%p248_p6), %608, %v336_v11  }
  0xaf   : >> { %v260_v14 = vpop.xlane.xlu0 %259  ;;  %v278_v15 = vpop.xlane.xlu1 %277 }
  0xb0   : >> { %v261_v16 = vrot.slane %v260_v14, 4  ;;  %v279_v17 = vrot.slane %v278_v15, 4 }
  0xb2   : >> { %v262_v18 = vadd.f32 %v261_v16, %v260_v14  ;;  %v280_v19 = vadd.f32 %v279_v17, %v278_v15  ;;  %v334_v14 = vld [vmem:[%s872_s28] sm:$0xff] (%p248_p6) }
  0xb3   : > { %362 = vmatpush.msra.mxu0 (%p248_p6), %v334_v14 }
  0xb4   : >> { %v263_v20 = vrot.slane %v262_v18, 2  ;;  %v281_v21 = vrot.slane %v280_v19, 2 }
  0xb6   : >> { %v264_v22 = vadd.f32 %v263_v20, %v262_v18  ;;  %v282_v24 = vadd.f32 %v281_v21, %v280_v19 }
  0xb7   : >> { %v269_v23 = vpop.xlane.xlu0 %268 }
  0xb8   : >> { %v270_v25 = vrot.slane %v269_v23, 4  ;;  %v265_v26 = vrot.slane %v264_v22, 1  ;;  %v283_v28 = vrot.slane %v282_v24, 1 }
  0xba   : >> { %v271_v27 = vadd.f32 %v270_v25, %v269_v23  ;;  %v266_v30 = vadd.f32 %v265_v26, %v264_v22  ;;  %v284_v32 = vadd.f32 %v283_v28, %v282_v24 }
  0xbc   : >> { %v272_v29 = vrot.slane %v271_v27, 2  ;;  %v292_v34 = vsub.f32 %v882_v5, %v266_v30  ;;  %v297_v38 = vsub.f32 %v886_v7, %v284_v32 }
  0xbe   : >> { %v273_v31 = vadd.f32 %v272_v29, %v271_v27  ;;  %v293_v41 = vmul.f32 %v292_v34, %v292_v34  ;;  %v298_v43 = vmul.f32 %v297_v38, %v297_v38 }
  0xc0   : >> { %v274_v33 = vrot.slane %v273_v31, 1 }
  0xc2   : >> { %v275_v35 = vadd.f32 %v274_v33, %v273_v31 }
  0xc4   : >> { %v286_v36 = vsel %vm285_vm3, %v266_v30, %v275_v35  ;;  %v294_v37 = vsub.f32 %v884_v6, %v275_v35 }
  0xc5   : >> { %v288_v39 = vsel %vm287_vm4, %v286_v36, %v284_v32 }
  0xc6   : >> { %291 = vst.msk [vmem:[%s289_s9] sm:$0x1] %vm290_vm5, %v288_v39  ;;  %v295_v40 = vmul.f32 %v294_v37, %v294_v37 }
  0xc8   : >> { %v296_v42 = vadd.f32 %v295_v40, %v293_v41 }
  0xca   : >> { %v299_v44 = vadd.f32 %v298_v43, %v296_v42  ;;  %v339_v15 = vpop.permute.xlu0 (%p248_p6), %338 }
  0xcb   : > { %vm340_vm12 = vcmp.eq.s32.totalorder (%p248_p6), %v339_v15, %v867_v2 }
  0xcc   : >> { %v300_v10 = vmin.f32 %v739_v10, %v299_v44  }
  0xce   : >> { %301 = vmax.xlane.f32.xlu1 %v300_v10 }
 0x141   : >> { %v302_v45 = vpop.xlane.xlu1 %301 }
 0x142   : >> { %v303_v46 = vrot.slane %v302_v45, 4 }
 0x144   : >> { %v304_v47 = vmax.f32 %v302_v45, %v303_v46 }
 0x146   : >> { %v305_v48 = vrot.slane %v304_v47, 2 }
 0x148   : >> { %v306_v49 = vmax.f32 %v304_v47, %v305_v48 }
 0x14a   : >> { %v307_v50 = vrot.slane %v306_v49, 1 }
 0x14c   : >> { %v308_v51 = vmax.f32 %v306_v49, %v307_v50 }
 0x14e   : >> { %vm309_vm6 = vcmp.eq.f32.partialorder %v300_v10, %v308_v51  ;;  %v750_v10 = vmov (%p248_p6), 0.0  }
 0x14f   : >> { %v310_v52 = vsel %vm309_vm6, %v880_v4, 1024  ;;  %v522_v16 = vsel (%p248_p6), %vm340_vm12, 1.0, %v750_v10 }
 0x150   : >> { %v312_v53 = vshra.s32 %v310_v52, 16  ;;  %v311_v55 = vand.u32 65535, %v310_v52  ;;  %523 = vmatmul.msk.f32.vlgmr.msra.gmra.mxu0 (%p248_p6), %vm343_vm11, %v522_v16 }
 0x152   : >> { %v314_v54 = vcvt.s32.f32 %v312_v53  ;;  %v313_v57 = vcvt.s32.f32 %v311_v55 }
 0x154   : >> { %315 = vmin.xlane.f32.xlu2 %v314_v54 }
 0x1c7   : >> { %v316_v56 = vpop.xlane.xlu2 %315 }
 0x1c8   : >> { %vm317_vm7 = vcmp.eq.f32.partialorder %v314_v54, %v316_v56  ;;  %v322_v59 = vcvt.f32.s32 %v316_v56 }
 0x1c9   : >> { %v318_v58 = vsel %vm317_vm7, %v313_v57, inf }
 0x1ca   : >> { %319 = vmin.xlane.f32.xlu2 %v318_v58  ;;  %v323_v61 = vshll.u32 %v322_v59, 16 }
 0x1cd   : > { %v364_v4 = vpop.f32.mrf.mxu0 (%p248_p6) }
 0x1ce   : > { %368 = vst.msk [vmem:[%s889_s6] sm:$0xf] (%p248_p6), %vm367_vm13, %v364_v4 }
 0x23d   : >> { %v320_v60 = vpop.xlane.xlu2 %319 }
 0x23e   : >> { %v321_v62 = vcvt.f32.s32 %v320_v60 }
 0x240   : >> { %v324_v63 = vadd.s32 %v323_v61, %v321_v62 }
 0x242   : >> { %v325_v0 = vrot.slane %v324_v63, 4 }
 0x244   : >> { %vm326_vm8 = vcmp.lt.s32.totalorder %v324_v63, %v325_v0 }
 0x245   : >> { %v327_v1 = vsel %vm326_vm8, %v324_v63, %v325_v0 }
 0x246   : >> { %v328_v3 = vrot.slane %v327_v1, 2 }
 0x248   : >> { %vm329_vm9 = vcmp.lt.s32.totalorder %v327_v1, %v328_v3 }
 0x249   : >> { %v330_v8 = vsel %vm329_vm9, %v327_v1, %v328_v3  ;;  %250 = sbr.rel (!%p248_p6) target bundleno = 58 (0x3a), region = 99 }
 0x24a   : >> { %v331_v9 = vrot.slane %v330_v8, 1 }
 0x24c   : >> { %vm332_vm10 = vcmp.lt.s32.totalorder %v330_v8, %v331_v9 }
 0x24d   : >> { %v333_v8 = vsel %vm332_vm10, %v330_v8, %v331_v9  }
 0x24e   : > { %678 = shalt.err (!%p675_p10)
}
 0x24f   : > { %534 = dma.vmem_to_hbm [thread:$0]  (%p825_p11), %s390_s14, 64, %s392_s15, %s374_s16  }
 0x250 PF: > { %s410_s8 = sand.u32 1, %s719_s19   ;;  %p541_p0 = pnand %p513_p9, %p829_p12 }
 0x251   : > { %s411_s6 = scalar_lea.sflag [#allocation7], %s410_s8 }
 0x252   : > { %p542_p1 = pneg %p541_p0 }
 0x254   : > { %714 = dma.done.wait (%p542_p1), %s411_s6, 64  }
 0x255   : > { %716 = vsyncadd (%p542_p1), %s411_s6, 4294967232  ;;  %p26_p13 = scmp.ge.s32.totalorder %s804_s24, 4   ;;  %s967_s19 = smov %s723_s20 }
 0x256   : > { %s968_s20 = smov %s727_s21  ;;  %s969_s21 = smov %s816_s27 }
 0x257   : > { %s970_s22 = smov %s804_s24  ;;  %28 = sbr.rel (!%p26_p13) target bundleno = 11 (0xb), region = 110 }
 0x25c   :  { %417 = vsyncpa [#allocation6], 1 }
 0x25d   :  { %419 = vsyncpa [#allocation6 + $0x1], 1 }
 0x25e   :  { %420 = vsyncpa [#allocation7], 1 }
 0x25f   :  { %422 = vsyncpa [#allocation7 + $0x1], 1 }

</bundles_post_ra>
